<compile_context>
chip_gen: v7x
topology: tpu7x:2x2x1
jax: 0.10.0
libtpu: 0.0.40
codegen_flags: <defaults>
</compile_context>

<pallas_src>
import functools

import jax
import jax.numpy as jnp
from jax import lax
from jax.experimental import pallas as pl
from jax.experimental.pallas import tpu as pltpu

EPS_IN = 1e-3   # InstanceNorm2d eps (as constructed in the module)
EPS_BN = 1e-5   # BatchNorm2d default eps


# --------------------------------------------------------------------------
# BlockSpec helpers
# --------------------------------------------------------------------------
def _batch_spec(shape):
    """One batch element per grid step; remaining dims taken whole."""
    rest = tuple(shape[1:])
    nrest = len(rest)
    return pl.BlockSpec((None,) + rest, lambda b: (b,) + (0,) * nrest)


def _const_spec(shape):
    """Whole array, same block every grid step (weights / folded affines)."""
    ndim = len(shape)
    return pl.BlockSpec(tuple(shape), lambda b: (0,) * ndim)


def _parallel_params():
    return pltpu.CompilerParams(dimension_semantics=("parallel",))


def _mm(a, b, mxu_dtype):
    """MXU matmul with optional bf16 inputs and f32 accumulation."""
    if mxu_dtype is not None:
        a = a.astype(mxu_dtype)
        b = b.astype(mxu_dtype)
    return jnp.dot(a, b, preferred_element_type=jnp.float32)


# --------------------------------------------------------------------------
# Kernels (one batch element per grid step; batch dim squeezed out of refs)
# --------------------------------------------------------------------------
def _conv1_kernel(x_ref, s_ref, t_ref, w_ref, b_ref,
                  out_ref, psum_ref, psq_ref, *, mxu_dtype):
    # x: (C, P1)   s,t: (C, 1)   w: (OC, C)   b: (OC, 1)
    y = jnp.maximum(x_ref[...] * s_ref[...] + t_ref[...], 0.0)   # fused IN+BN+ReLU
    o = _mm(w_ref[...], y, mxu_dtype) + b_ref[...]               # (OC, P1)
    out_ref[...] = o
    # BN2 partial statistics (per point): reduce over OC here, over batch in JAX.
    psum_ref[...] = jnp.sum(o, axis=0, keepdims=True)            # (1, P1)
    psq_ref[...] = jnp.sum(o * o, axis=0, keepdims=True)


def _conv2a_kernel(a_ref, s_ref, t_ref, w2t_ref, b_ref,
                   z_ref, psum_ref, psq_ref, *, mxu_dtype):
    # a: (OC, P1)   s,t: (1, P1)   w2t: (P1, P2)   b: (1, P2)
    h = jnp.maximum(a_ref[...] * s_ref[...] + t_ref[...], 0.0)   # BN2+ReLU
    z = _mm(h, w2t_ref[...], mxu_dtype) + b_ref[...]             # (OC, P2)
    z_ref[...] = z
    psum_ref[...] = jnp.sum(z, axis=0, keepdims=True)            # (1, P2)
    psq_ref[...] = jnp.sum(z * z, axis=0, keepdims=True)


def _conv2b_kernel(a_ref, z_ref, s_ref, t_ref, w3t_ref, b_ref,
                   out2_ref, rmu_ref, rvar_ref, *, mxu_dtype):
    # a: (OC, P1)   z: (OC, P2)   s,t: (1, P2)   w3t: (P2, P1)   b: (1, P1)
    h = jnp.maximum(z_ref[...] * s_ref[...] + t_ref[...], 0.0)   # BN3+ReLU
    d = _mm(h, w3t_ref[...], mxu_dtype) + b_ref[...]             # (OC, P1)
    o2 = a_ref[...] + d                                          # conv2 residual
    out2_ref[...] = o2
    # InstanceNorm row statistics for conv3: per (b, oc) over points (two-pass).
    mu = jnp.mean(o2, axis=-1, keepdims=True)                    # (OC, 1)
    rmu_ref[...] = mu
    rvar_ref[...] = jnp.mean((o2 - mu) ** 2, axis=-1, keepdims=True)


def _conv3_kernel(o2_ref, x_ref, s_ref, t_ref, w4_ref, b_ref,
                  o_ref, *, mxu_dtype):
    # o2, x: (C, P1)   s,t: (OC, 1)   w4: (OC, OC)   b: (OC, 1)
    v = jnp.maximum(o2_ref[...] * s_ref[...] + t_ref[...], 0.0)  # fused IN+BN+ReLU
    o = _mm(w4_ref[...], v, mxu_dtype) + b_ref[...]              # (OC, P1)
    o_ref[...] = (o + x_ref[...]).astype(o_ref.dtype)            # + x (no shot_cut)


# --------------------------------------------------------------------------
# pallas_call wrappers (grid over the batch, "parallel")
# --------------------------------------------------------------------------
def _call_conv1(x, s1, t1, w1, b1, mxu_dtype):
    B, C, P1 = x.shape
    OC = w1.shape[0]
    f32 = jnp.float32
    return pl.pallas_call(
        functools.partial(_conv1_kernel, mxu_dtype=mxu_dtype),
        grid=(B,),
        in_specs=[_batch_spec(x.shape), _batch_spec(s1.shape), _batch_spec(t1.shape),
                  _const_spec(w1.shape), _const_spec(b1.shape)],
        out_specs=(_batch_spec((B, OC, P1)),
                   _batch_spec((B, 1, P1)),
                   _batch_spec((B, 1, P1))),
        out_shape=(jax.ShapeDtypeStruct((B, OC, P1), f32),
                   jax.ShapeDtypeStruct((B, 1, P1), f32),
                   jax.ShapeDtypeStruct((B, 1, P1), f32)),
        compiler_params=_parallel_params(),
    )(x, s1, t1, w1, b1)


def _call_conv2a(out1, s2, t2, w2t, b2, mxu_dtype):
    B, OC, P1 = out1.shape
    P2 = w2t.shape[1]
    f32 = jnp.float32
    return pl.pallas_call(
        functools.partial(_conv2a_kernel, mxu_dtype=mxu_dtype),
        grid=(B,),
        in_specs=[_batch_spec(out1.shape), _const_spec(s2.shape), _const_spec(t2.shape),
                  _const_spec(w2t.shape), _const_spec(b2.shape)],
        out_specs=(_batch_spec((B, OC, P2)),
                   _batch_spec((B, 1, P2)),
                   _batch_spec((B, 1, P2))),
        out_shape=(jax.ShapeDtypeStruct((B, OC, P2), f32),
                   jax.ShapeDtypeStruct((B, 1, P2), f32),
                   jax.ShapeDtypeStruct((B, 1, P2), f32)),
        compiler_params=_parallel_params(),
    )(out1, s2, t2, w2t, b2)


def _call_conv2b(out1, z1, s3, t3, w3t, b3, mxu_dtype):
    B, OC, P1 = out1.shape
    f32 = jnp.float32
    return pl.pallas_call(
        functools.partial(_conv2b_kernel, mxu_dtype=mxu_dtype),
        grid=(B,),
        in_specs=[_batch_spec(out1.shape), _batch_spec(z1.shape),
                  _const_spec(s3.shape), _const_spec(t3.shape),
                  _const_spec(w3t.shape), _const_spec(b3.shape)],
        out_specs=(_batch_spec((B, OC, P1)),
                   _batch_spec((B, OC, 1)),
                   _batch_spec((B, OC, 1))),
        out_shape=(jax.ShapeDtypeStruct((B, OC, P1), f32),
                   jax.ShapeDtypeStruct((B, OC, 1), f32),
                   jax.ShapeDtypeStruct((B, OC, 1), f32)),
        compiler_params=_parallel_params(),
    )(out1, z1, s3, t3, w3t, b3)


def _call_conv3(out2, x, s4, t4, w4, b4, mxu_dtype):
    B, C, P1 = x.shape
    return pl.pallas_call(
        functools.partial(_conv3_kernel, mxu_dtype=mxu_dtype),
        grid=(B,),
        in_specs=[_batch_spec(out2.shape), _batch_spec(x.shape),
                  _batch_spec(s4.shape), _batch_spec(t4.shape),
                  _const_spec(w4.shape), _const_spec(b4.shape)],
        out_specs=_batch_spec((B, C, P1)),
        out_shape=jax.ShapeDtypeStruct((B, C, P1), x.dtype),
        compiler_params=_parallel_params(),
    )(out2, x, s4, t4, w4, b4)


# --------------------------------------------------------------------------
# Forward pass
# --------------------------------------------------------------------------
@functools.partial(jax.jit, static_argnames=("use_bf16_matmul",))
def oafilter_bottleneck(x_nchw, p, use_bf16_matmul=False):
    """x_nchw: (B, channels, points1, 1) float32 -> same shape (NCHW)."""
    B, C, P1, W = x_nchw.shape
    assert W == 1, "kernel assumes the OANet layout (B, C, N, 1)"
    OC = p['w1'].shape[0]
    P2 = p['w2'].shape[0]
    assert OC == C, "default out_channels == channels (no shot_cut)"
    mxu_dtype = jnp.bfloat16 if use_bf16_matmul else None

    x = x_nchw[..., 0]                                   # (B, C, P1) -- no transpose

    # ---- stage 1: fold InstanceNorm(C) + BatchNorm(C) into one per-(b,c) affine ----
    mu1 = jnp.mean(x, axis=2, keepdims=True)                         # (B, C, 1)
    var1 = jnp.mean((x - mu1) ** 2, axis=2, keepdims=True)           # (B, C, 1)
    r1 = lax.rsqrt(var1 + EPS_IN)
    # BN over IN(x): the per-channel batch mean is 0 and each normalized row's
    # second moment is var/(var+eps), so BN1 stats follow from the row stats.
    bn1_var = jnp.mean(var1 / (var1 + EPS_IN), axis=0)               # (C, 1)
    g1c = p['g1'].reshape(C, 1) * lax.rsqrt(bn1_var + EPS_BN)        # (C, 1)
    S1 = r1 * g1c[None]                                              # (B, C, 1)
    T1 = p['be1'].reshape(1, C, 1) - mu1 * S1                        # (B, C, 1)

    # ---- Call A: conv1 (affine+relu+matmul) + BN2 partial stats ----
    out1, ps2, pq2 = _call_conv1(x, S1, T1, p['w1'],
                                 p['bc1'].reshape(OC, 1), mxu_dtype)

    n = float(B * OC)
    m2 = jnp.sum(ps2, axis=0) / n                                    # (1, P1)
    v2 = jnp.maximum(jnp.sum(pq2, axis=0) / n - m2 * m2, 0.0)
    s2 = p['g2'].reshape(1, P1) * lax.rsqrt(v2 + EPS_BN)
    t2 = p['be2'].reshape(1, P1) - m2 * s2

    # ---- Call B: first half of conv2 + BN3 partial stats ----
    z1, ps3, pq3 = _call_conv2a(out1, s2, t2, p['w2'].T,
                                p['bc2'].reshape(1, P2), mxu_dtype)

    m3 = jnp.sum(ps3, axis=0) / n                                    # (1, P2)
    v3 = jnp.maximum(jnp.sum(pq3, axis=0) / n - m3 * m3, 0.0)
    s3 = p['g3'].reshape(1, P2) * lax.rsqrt(v3 + EPS_BN)
    t3 = p['be3'].reshape(1, P2) - m3 * s3

    # ---- Call C: second half of conv2 + residual + IN row stats for conv3 ----
    out2, rmu, rvar = _call_conv2b(out1, z1, s3, t3, p['w3'].T,
                                   p['bc3'].reshape(1, P1), mxu_dtype)

    # ---- stage 3: fold InstanceNorm(OC) + BatchNorm(OC) into one per-(b,oc) affine ----
    bn4_var = jnp.mean(rvar / (rvar + EPS_IN), axis=0)               # (OC, 1)
    g4c = p['g4'].reshape(OC, 1) * lax.rsqrt(bn4_var + EPS_BN)       # (OC, 1)
    S4 = lax.rsqrt(rvar + EPS_IN) * g4c[None]                        # (B, OC, 1)
    T4 = p['be4'].reshape(1, OC, 1) - rmu * S4                       # (B, OC, 1)

    # ---- Call D: conv3 (affine+relu+matmul) + final residual (+ x) ----
    out = _call_conv3(out2, x, S4, T4, p['w4'],
                      p['bc4'].reshape(OC, 1), mxu_dtype)

    return out[..., None]                                            # back to NCHW


# ---------------- deterministic parameter init (synthetic, no checkpoint) ----------------
def init_params(key, C, P1, P2, OC):
    ks = jax.random.split(key, 16)
    u = lambda k, s: jax.random.uniform(k, s, jnp.float32, -1.0, 1.0)
    return dict(
        g1=1.0 + 0.1 * u(ks[0], (C,)),   be1=0.1 * u(ks[1], (C,)),
        w1=u(ks[2], (OC, C)) / jnp.sqrt(float(C)),    bc1=0.1 * u(ks[3], (OC,)),
        g2=1.0 + 0.1 * u(ks[4], (P1,)),  be2=0.1 * u(ks[5], (P1,)),
        w2=u(ks[6], (P2, P1)) / jnp.sqrt(float(P1)),  bc2=0.1 * u(ks[7], (P2,)),
        g3=1.0 + 0.1 * u(ks[8], (P2,)),  be3=0.1 * u(ks[9], (P2,)),
        w3=u(ks[10], (P1, P2)) / jnp.sqrt(float(P2)), bc3=0.1 * u(ks[11], (P1,)),
        g4=1.0 + 0.1 * u(ks[12], (OC,)), be4=0.1 * u(ks[13], (OC,)),
        w4=u(ks[14], (OC, OC)) / jnp.sqrt(float(OC)), bc4=0.1 * u(ks[15], (OC,)),
    )


# ---------------- pure-JAX reference mirroring the PyTorch module (NCHW) ----------------
def reference_forward(x, p):
    relu = lambda t: jnp.maximum(t, 0.0)

    def inorm(t, eps):
        mu = jnp.mean(t, axis=(2, 3), keepdims=True)
        var = jnp.mean((t - mu) ** 2, axis=(2, 3), keepdims=True)
        return (t - mu) / jnp.sqrt(var + eps)

    def bnorm(t, g, b, eps=EPS_BN):
        mu = jnp.mean(t, axis=(0, 2, 3), keepdims=True)
        var = jnp.mean((t - mu) ** 2, axis=(0, 2, 3), keepdims=True)
        return (t - mu) / jnp.sqrt(var + eps) * g.reshape(1, -1, 1, 1) + b.reshape(1, -1, 1, 1)

    def conv1x1(t, w, b):
        return jnp.einsum('oc,bchw->bohw', w, t) + b.reshape(1, -1, 1, 1)

    # conv1
    y = conv1x1(relu(bnorm(inorm(x, EPS_IN), p['g1'], p['be1'])), p['w1'], p['bc1'])
    out = jnp.transpose(y, (0, 2, 1, 3))                             # trans(1, 2)
    # conv2
    z = conv1x1(relu(bnorm(out, p['g2'], p['be2'])), p['w2'], p['bc2'])
    z = conv1x1(relu(bnorm(z, p['g3'], p['be3'])), p['w3'], p['bc3'])
    out = out + z
    # conv3
    u = jnp.transpose(out, (0, 2, 1, 3))                             # trans(1, 2)
    u = conv1x1(relu(bnorm(inorm(u, EPS_IN), p['g4'], p['be4'])), p['w4'], p['bc4'])
    return u + x                                                     # shot_cut is None


if __name__ == "__main__":
    B, C, P1, P2 = 2, 8, 16, 8          # channels=8, points1=16, points2=8, out_channels=channels
    key = jax.random.PRNGKey(0)
    kx, kp = jax.random.split(key)
    x = jax.random.normal(kx, (B, C, P1, 1), jnp.float32)
    params = init_params(kp, C, P1, P2, C)

    ref = jax.block_until_ready(reference_forward(x, params))

    # f32 MXU path: must match the PyTorch semantics tightly.
    out = jax.block_until_ready(oafilter_bottleneck(x, params, use_bf16_matmul=False))
    assert out.shape == x.shape and out.dtype == x.dtype
    if not bool(jnp.allclose(out, ref, atol=3e-4, rtol=1e-3)):
        raise AssertionError(
            f"f32 kernel/reference mismatch, max abs err = {float(jnp.max(jnp.abs(out - ref)))}")

    # bf16-MXU fast path (perf mode): same structure, looser numeric check.
    out_bf = jax.block_until_ready(oafilter_bottleneck(x, params, use_bf16_matmul=True))
    assert out_bf.shape == x.shape
    assert bool(jnp.all(jnp.isfinite(out_bf)))
    if float(jnp.max(jnp.abs(out_bf - ref))) > 0.25:
        raise AssertionError("bf16 fast path deviates too far from reference")

    print("KERNEL_OK")
</pallas_src>

<mosaic_0001>
module attributes {stable_mosaic.version = 11 : i64} {
  func.func @_conv1_kernel(%arg0: i32, %arg1: memref<1x8x16xf32, #tpu.memory_space<vmem>>, %arg2: memref<1x8x1xf32, #tpu.memory_space<vmem>>, %arg3: memref<1x8x1xf32, #tpu.memory_space<vmem>>, %arg4: memref<8x8xf32, #tpu.memory_space<vmem>>, %arg5: memref<8x1xf32, #tpu.memory_space<vmem>>, %arg6: memref<1x8x16xf32, #tpu.memory_space<vmem>>, %arg7: memref<1x1x16xf32, #tpu.memory_space<vmem>>, %arg8: memref<1x1x16xf32, #tpu.memory_space<vmem>>) attributes {dimension_semantics = [#tpu.dimension_semantics<parallel>], iteration_bounds = array<i64: 2>, scalar_prefetch = 0 : i64, scratch_operands = 0 : i64, tpu.core_type = #tpu.core_type<tc>, window_params = [{transform_indices = @transform_0, window_bounds = array<i64: 1, 8, 16>}, {transform_indices = @transform_1, window_bounds = array<i64: 1, 8, 1>}, {transform_indices = @transform_2, window_bounds = array<i64: 1, 8, 1>}, {pipeline_mode = #tpu.pipeline_mode<synchronous>, transform_indices = @transform_3, window_bounds = array<i64: 8, 8>}, {pipeline_mode = #tpu.pipeline_mode<synchronous>, transform_indices = @transform_4, window_bounds = array<i64: 8, 1>}, {transform_indices = @transform_5, window_bounds = array<i64: 1, 8, 16>}, {transform_indices = @transform_6, window_bounds = array<i64: 1, 1, 16>}, {transform_indices = @transform_7, window_bounds = array<i64: 1, 1, 16>}]} {
    %c0 = arith.constant 0 : index
    %c0_0 = arith.constant 0 : index
    %c0_1 = arith.constant 0 : index
    %0 = vector.load %arg1[%c0, %c0_0, %c0_1] : memref<1x8x16xf32, #tpu.memory_space<vmem>>, vector<1x8x16xf32>
    %1 = vector.shape_cast %0 : vector<1x8x16xf32> to vector<8x16xf32>
    %c0_2 = arith.constant 0 : index
    %c0_3 = arith.constant 0 : index
    %c0_4 = arith.constant 0 : index
    %2 = vector.load %arg2[%c0_2, %c0_3, %c0_4] : memref<1x8x1xf32, #tpu.memory_space<vmem>>, vector<1x8x1xf32>
    %3 = vector.shape_cast %2 : vector<1x8x1xf32> to vector<8x1xf32>
    %4 = vector.broadcast %3 : vector<8x1xf32> to vector<8x16xf32>
    %5 = arith.mulf %1, %4 : vector<8x16xf32>
    %c0_5 = arith.constant 0 : index
    %c0_6 = arith.constant 0 : index
    %c0_7 = arith.constant 0 : index
    %6 = vector.load %arg3[%c0_5, %c0_6, %c0_7] : memref<1x8x1xf32, #tpu.memory_space<vmem>>, vector<1x8x1xf32>
    %7 = vector.shape_cast %6 : vector<1x8x1xf32> to vector<8x1xf32>
    %8 = vector.broadcast %7 : vector<8x1xf32> to vector<8x16xf32>
    %9 = arith.addf %5, %8 : vector<8x16xf32>
    %cst = arith.constant 0.000000e+00 : f32
    %10 = vector.broadcast %cst : f32 to vector<8x16xf32>
    %11 = arith.maximumf %9, %10 : vector<8x16xf32>
    %c0_8 = arith.constant 0 : index
    %c0_9 = arith.constant 0 : index
    %12 = vector.load %arg4[%c0_8, %c0_9] : memref<8x8xf32, #tpu.memory_space<vmem>>, vector<8x8xf32>
    %cst_10 = arith.constant dense<0.000000e+00> : vector<8x16xf32>
    %13 = tpu.matmul %12, %11, %cst_10 {dimension_numbers = #tpu.dot_dimension_numbers<[1], [0], [0], [1], [0, 0, 1, 1], [], []>} : vector<8x8xf32>, vector<8x16xf32>, vector<8x16xf32> -> vector<8x16xf32>
    %c0_11 = arith.constant 0 : index
    %c0_12 = arith.constant 0 : index
    %14 = vector.load %arg5[%c0_11, %c0_12] : memref<8x1xf32, #tpu.memory_space<vmem>>, vector<8x1xf32>
    %15 = vector.broadcast %14 : vector<8x1xf32> to vector<8x16xf32>
    %16 = arith.addf %13, %15 : vector<8x16xf32>
    %c0_13 = arith.constant 0 : index
    %c0_14 = arith.constant 0 : index
    %c0_15 = arith.constant 0 : index
    %17 = vector.load %arg6[%c0_13, %c0_14, %c0_15] : memref<1x8x16xf32, #tpu.memory_space<vmem>>, vector<1x8x16xf32>
    %18 = vector.shape_cast %17 : vector<1x8x16xf32> to vector<8x16xf32>
    %19 = vector.shape_cast %16 : vector<8x16xf32> to vector<1x8x16xf32>
    tpu.vector_store %arg6[%c0_13, %c0_14, %c0_15], %19 {strides = array<i32>} : memref<1x8x16xf32, #tpu.memory_space<vmem>>, vector<1x8x16xf32>,
    %cst_16 = arith.constant dense<0.000000e+00> : vector<16xf32>
    %20 = vector.multi_reduction <add>, %16, %cst_16 [0] : vector<8x16xf32> to vector<16xf32>
    %21 = vector.shape_cast %20 : vector<16xf32> to vector<1x16xf32>
    %c0_17 = arith.constant 0 : index
    %c0_18 = arith.constant 0 : index
    %c0_19 = arith.constant 0 : index
    %22 = vector.load %arg7[%c0_17, %c0_18, %c0_19] : memref<1x1x16xf32, #tpu.memory_space<vmem>>, vector<1x1x16xf32>
    %23 = vector.shape_cast %22 : vector<1x1x16xf32> to vector<1x16xf32>
    %24 = vector.shape_cast %21 : vector<1x16xf32> to vector<1x1x16xf32>
    tpu.vector_store %arg7[%c0_17, %c0_18, %c0_19], %24 {strides = array<i32>} : memref<1x1x16xf32, #tpu.memory_space<vmem>>, vector<1x1x16xf32>,
    %25 = arith.mulf %16, %16 : vector<8x16xf32>
    %cst_20 = arith.constant dense<0.000000e+00> : vector<16xf32>
    %26 = vector.multi_reduction <add>, %25, %cst_20 [0] : vector<8x16xf32> to vector<16xf32>
    %27 = vector.shape_cast %26 : vector<16xf32> to vector<1x16xf32>
    %c0_21 = arith.constant 0 : index
    %c0_22 = arith.constant 0 : index
    %c0_23 = arith.constant 0 : index
    %28 = vector.load %arg8[%c0_21, %c0_22, %c0_23] : memref<1x1x16xf32, #tpu.memory_space<vmem>>, vector<1x1x16xf32>
    %29 = vector.shape_cast %28 : vector<1x1x16xf32> to vector<1x16xf32>
    %30 = vector.shape_cast %27 : vector<1x16xf32> to vector<1x1x16xf32>
    tpu.vector_store %arg8[%c0_21, %c0_22, %c0_23], %30 {strides = array<i32>} : memref<1x1x16xf32, #tpu.memory_space<vmem>>, vector<1x1x16xf32>,
    return
  }
  func.func @transform_0(%arg0: i32) -> (i32, i32, i32) {
    %c0_i32 = arith.constant 0 : i32
    %c0_i32_0 = arith.constant 0 : i32
    %c0_i32_1 = arith.constant 0 : i32
    return %arg0, %c0_i32, %c0_i32_0 : i32, i32, i32
  }
  func.func @transform_1(%arg0: i32) -> (i32, i32, i32) {
    %c0_i32 = arith.constant 0 : i32
    %c0_i32_0 = arith.constant 0 : i32
    %c0_i32_1 = arith.constant 0 : i32
    return %arg0, %c0_i32, %c0_i32_0 : i32, i32, i32
  }
  func.func @transform_2(%arg0: i32) -> (i32, i32, i32) {
    %c0_i32 = arith.constant 0 : i32
    %c0_i32_0 = arith.constant 0 : i32
    %c0_i32_1 = arith.constant 0 : i32
    return %arg0, %c0_i32, %c0_i32_0 : i32, i32, i32
  }
  func.func @transform_3(%arg0: i32) -> (i32, i32) {
    %c0_i32 = arith.constant 0 : i32
    %c0_i32_0 = arith.constant 0 : i32
    %c0_i32_1 = arith.constant 0 : i32
    return %c0_i32, %c0_i32_0 : i32, i32
  }
  func.func @transform_4(%arg0: i32) -> (i32, i32) {
    %c0_i32 = arith.constant 0 : i32
    %c0_i32_0 = arith.constant 0 : i32
    %c0_i32_1 = arith.constant 0 : i32
    return %c0_i32, %c0_i32_0 : i32, i32
  }
  func.func @transform_5(%arg0: i32) -> (i32, i32, i32) {
    %c0_i32 = arith.constant 0 : i32
    %c0_i32_0 = arith.constant 0 : i32
    %c0_i32_1 = arith.constant 0 : i32
    return %arg0, %c0_i32, %c0_i32_0 : i32, i32, i32
  }
  func.func @transform_6(%arg0: i32) -> (i32, i32, i32) {
    %c0_i32 = arith.constant 0 : i32
    %c0_i32_0 = arith.constant 0 : i32
    %c0_i32_1 = arith.constant 0 : i32
    return %arg0, %c0_i32, %c0_i32_0 : i32, i32, i32
  }
  func.func @transform_7(%arg0: i32) -> (i32, i32, i32) {
    %c0_i32 = arith.constant 0 : i32
    %c0_i32_0 = arith.constant 0 : i32
    %c0_i32_1 = arith.constant 0 : i32
    return %arg0, %c0_i32, %c0_i32_0 : i32, i32, i32
  }
}

module attributes {stable_mosaic.version = 11 : i64} {
  func.func @_conv2a_kernel(%arg0: i32, %arg1: memref<1x8x16xf32, #tpu.memory_space<vmem>>, %arg2: memref<1x16xf32, #tpu.memory_space<vmem>>, %arg3: memref<1x16xf32, #tpu.memory_space<vmem>>, %arg4: memref<16x8xf32, #tpu.memory_space<vmem>>, %arg5: memref<1x8xf32, #tpu.memory_space<vmem>>, %arg6: memref<1x8x8xf32, #tpu.memory_space<vmem>>, %arg7: memref<1x1x8xf32, #tpu.memory_space<vmem>>, %arg8: memref<1x1x8xf32, #tpu.memory_space<vmem>>) attributes {dimension_semantics = [#tpu.dimension_semantics<parallel>], iteration_bounds = array<i64: 2>, scalar_prefetch = 0 : i64, scratch_operands = 0 : i64, tpu.core_type = #tpu.core_type<tc>, window_params = [{transform_indices = @transform_0, window_bounds = array<i64: 1, 8, 16>}, {pipeline_mode = #tpu.pipeline_mode<synchronous>, transform_indices = @transform_1, window_bounds = array<i64: 1, 16>}, {pipeline_mode = #tpu.pipeline_mode<synchronous>, transform_indices = @transform_2, window_bounds = array<i64: 1, 16>}, {pipeline_mode = #tpu.pipeline_mode<synchronous>, transform_indices = @transform_3, window_bounds = array<i64: 16, 8>}, {pipeline_mode = #tpu.pipeline_mode<synchronous>, transform_indices = @transform_4, window_bounds = array<i64: 1, 8>}, {transform_indices = @transform_5, window_bounds = array<i64: 1, 8, 8>}, {transform_indices = @transform_6, window_bounds = array<i64: 1, 1, 8>}, {transform_indices = @transform_7, window_bounds = array<i64: 1, 1, 8>}]} {
    %c0 = arith.constant 0 : index
    %c0_0 = arith.constant 0 : index
    %c0_1 = arith.constant 0 : index
    %0 = vector.load %arg1[%c0, %c0_0, %c0_1] : memref<1x8x16xf32, #tpu.memory_space<vmem>>, vector<1x8x16xf32>
    %1 = vector.shape_cast %0 : vector<1x8x16xf32> to vector<8x16xf32>
    %c0_2 = arith.constant 0 : index
    %c0_3 = arith.constant 0 : index
    %2 = vector.load %arg2[%c0_2, %c0_3] : memref<1x16xf32, #tpu.memory_space<vmem>>, vector<1x16xf32>
    %3 = vector.broadcast %2 : vector<1x16xf32> to vector<8x16xf32>
    %4 = arith.mulf %1, %3 : vector<8x16xf32>
    %c0_4 = arith.constant 0 : index
    %c0_5 = arith.constant 0 : index
    %5 = vector.load %arg3[%c0_4, %c0_5] : memref<1x16xf32, #tpu.memory_space<vmem>>, vector<1x16xf32>
    %6 = vector.broadcast %5 : vector<1x16xf32> to vector<8x16xf32>
    %7 = arith.addf %4, %6 : vector<8x16xf32>
    %cst = arith.constant 0.000000e+00 : f32
    %8 = vector.broadcast %cst : f32 to vector<8x16xf32>
    %9 = arith.maximumf %7, %8 : vector<8x16xf32>
    %c0_6 = arith.constant 0 : index
    %c0_7 = arith.constant 0 : index
    %10 = vector.load %arg4[%c0_6, %c0_7] : memref<16x8xf32, #tpu.memory_space<vmem>>, vector<16x8xf32>
    %cst_8 = arith.constant dense<0.000000e+00> : vector<8x8xf32>
    %11 = tpu.matmul %9, %10, %cst_8 {dimension_numbers = #tpu.dot_dimension_numbers<[1], [0], [0], [1], [0, 0, 1, 1], [], []>} : vector<8x16xf32>, vector<16x8xf32>, vector<8x8xf32> -> vector<8x8xf32>
    %c0_9 = arith.constant 0 : index
    %c0_10 = arith.constant 0 : index
    %12 = vector.load %arg5[%c0_9, %c0_10] : memref<1x8xf32, #tpu.memory_space<vmem>>, vector<1x8xf32>
    %13 = vector.broadcast %12 : vector<1x8xf32> to vector<8x8xf32>
    %14 = arith.addf %11, %13 : vector<8x8xf32>
    %c0_11 = arith.constant 0 : index
    %c0_12 = arith.constant 0 : index
    %c0_13 = arith.constant 0 : index
    %15 = vector.load %arg6[%c0_11, %c0_12, %c0_13] : memref<1x8x8xf32, #tpu.memory_space<vmem>>, vector<1x8x8xf32>
    %16 = vector.shape_cast %15 : vector<1x8x8xf32> to vector<8x8xf32>
    %17 = vector.shape_cast %14 : vector<8x8xf32> to vector<1x8x8xf32>
    tpu.vector_store %arg6[%c0_11, %c0_12, %c0_13], %17 {strides = array<i32>} : memref<1x8x8xf32, #tpu.memory_space<vmem>>, vector<1x8x8xf32>,
    %cst_14 = arith.constant dense<0.000000e+00> : vector<8xf32>
    %18 = vector.multi_reduction <add>, %14, %cst_14 [0] : vector<8x8xf32> to vector<8xf32>
    %19 = vector.shape_cast %18 : vector<8xf32> to vector<1x8xf32>
    %c0_15 = arith.constant 0 : index
    %c0_16 = arith.constant 0 : index
    %c0_17 = arith.constant 0 : index
    %20 = vector.load %arg7[%c0_15, %c0_16, %c0_17] : memref<1x1x8xf32, #tpu.memory_space<vmem>>, vector<1x1x8xf32>
    %21 = vector.shape_cast %20 : vector<1x1x8xf32> to vector<1x8xf32>
    %22 = vector.shape_cast %19 : vector<1x8xf32> to vector<1x1x8xf32>
    tpu.vector_store %arg7[%c0_15, %c0_16, %c0_17], %22 {strides = array<i32>} : memref<1x1x8xf32, #tpu.memory_space<vmem>>, vector<1x1x8xf32>,
    %23 = arith.mulf %14, %14 : vector<8x8xf32>
    %cst_18 = arith.constant dense<0.000000e+00> : vector<8xf32>
    %24 = vector.multi_reduction <add>, %23, %cst_18 [0] : vector<8x8xf32> to vector<8xf32>
    %25 = vector.shape_cast %24 : vector<8xf32> to vector<1x8xf32>
    %c0_19 = arith.constant 0 : index
    %c0_20 = arith.constant 0 : index
    %c0_21 = arith.constant 0 : index
    %26 = vector.load %arg8[%c0_19, %c0_20, %c0_21] : memref<1x1x8xf32, #tpu.memory_space<vmem>>, vector<1x1x8xf32>
    %27 = vector.shape_cast %26 : vector<1x1x8xf32> to vector<1x8xf32>
    %28 = vector.shape_cast %25 : vector<1x8xf32> to vector<1x1x8xf32>
    tpu.vector_store %arg8[%c0_19, %c0_20, %c0_21], %28 {strides = array<i32>} : memref<1x1x8xf32, #tpu.memory_space<vmem>>, vector<1x1x8xf32>,
    return
  }
  func.func @transform_0(%arg0: i32) -> (i32, i32, i32) {
    %c0_i32 = arith.constant 0 : i32
    %c0_i32_0 = arith.constant 0 : i32
    %c0_i32_1 = arith.constant 0 : i32
    return %arg0, %c0_i32, %c0_i32_0 : i32, i32, i32
  }
  func.func @transform_1(%arg0: i32) -> (i32, i32) {
    %c0_i32 = arith.constant 0 : i32
    %c0_i32_0 = arith.constant 0 : i32
    %c0_i32_1 = arith.constant 0 : i32
    return %c0_i32, %c0_i32_0 : i32, i32
  }
  func.func @transform_2(%arg0: i32) -> (i32, i32) {
    %c0_i32 = arith.constant 0 : i32
    %c0_i32_0 = arith.constant 0 : i32
    %c0_i32_1 = arith.constant 0 : i32
    return %c0_i32, %c0_i32_0 : i32, i32
  }
  func.func @transform_3(%arg0: i32) -> (i32, i32) {
    %c0_i32 = arith.constant 0 : i32
    %c0_i32_0 = arith.constant 0 : i32
    %c0_i32_1 = arith.constant 0 : i32
    return %c0_i32, %c0_i32_0 : i32, i32
  }
  func.func @transform_4(%arg0: i32) -> (i32, i32) {
    %c0_i32 = arith.constant 0 : i32
    %c0_i32_0 = arith.constant 0 : i32
    %c0_i32_1 = arith.constant 0 : i32
    return %c0_i32, %c0_i32_0 : i32, i32
  }
  func.func @transform_5(%arg0: i32) -> (i32, i32, i32) {
    %c0_i32 = arith.constant 0 : i32
    %c0_i32_0 = arith.constant 0 : i32
    %c0_i32_1 = arith.constant 0 : i32
    return %arg0, %c0_i32, %c0_i32_0 : i32, i32, i32
  }
  func.func @transform_6(%arg0: i32) -> (i32, i32, i32) {
    %c0_i32 = arith.constant 0 : i32
    %c0_i32_0 = arith.constant 0 : i32
    %c0_i32_1 = arith.constant 0 : i32
    return %arg0, %c0_i32, %c0_i32_0 : i32, i32, i32
  }
  func.func @transform_7(%arg0: i32) -> (i32, i32, i32) {
    %c0_i32 = arith.constant 0 : i32
    %c0_i32_0 = arith.constant 0 : i32
    %c0_i32_1 = arith.constant 0 : i32
    return %arg0, %c0_i32, %c0_i32_0 : i32, i32, i32
  }
}

module attributes {stable_mosaic.version = 11 : i64} {
  func.func @_conv2b_kernel(%arg0: i32, %arg1: memref<1x8x16xf32, #tpu.memory_space<vmem>>, %arg2: memref<1x8x8xf32, #tpu.memory_space<vmem>>, %arg3: memref<1x8xf32, #tpu.memory_space<vmem>>, %arg4: memref<1x8xf32, #tpu.memory_space<vmem>>, %arg5: memref<8x16xf32, #tpu.memory_space<vmem>>, %arg6: memref<1x16xf32, #tpu.memory_space<vmem>>, %arg7: memref<1x8x16xf32, #tpu.memory_space<vmem>>, %arg8: memref<1x8x1xf32, #tpu.memory_space<vmem>>, %arg9: memref<1x8x1xf32, #tpu.memory_space<vmem>>) attributes {dimension_semantics = [#tpu.dimension_semantics<parallel>], iteration_bounds = array<i64: 2>, scalar_prefetch = 0 : i64, scratch_operands = 0 : i64, tpu.core_type = #tpu.core_type<tc>, window_params = [{transform_indices = @transform_0, window_bounds = array<i64: 1, 8, 16>}, {transform_indices = @transform_1, window_bounds = array<i64: 1, 8, 8>}, {pipeline_mode = #tpu.pipeline_mode<synchronous>, transform_indices = @transform_2, window_bounds = array<i64: 1, 8>}, {pipeline_mode = #tpu.pipeline_mode<synchronous>, transform_indices = @transform_3, window_bounds = array<i64: 1, 8>}, {pipeline_mode = #tpu.pipeline_mode<synchronous>, transform_indices = @transform_4, window_bounds = array<i64: 8, 16>}, {pipeline_mode = #tpu.pipeline_mode<synchronous>, transform_indices = @transform_5, window_bounds = array<i64: 1, 16>}, {transform_indices = @transform_6, window_bounds = array<i64: 1, 8, 16>}, {transform_indices = @transform_7, window_bounds = array<i64: 1, 8, 1>}, {transform_indices = @transform_8, window_bounds = array<i64: 1, 8, 1>}]} {
    %c0 = arith.constant 0 : index
    %c0_0 = arith.constant 0 : index
    %c0_1 = arith.constant 0 : index
    %0 = vector.load %arg2[%c0, %c0_0, %c0_1] : memref<1x8x8xf32, #tpu.memory_space<vmem>>, vector<1x8x8xf32>
    %1 = vector.shape_cast %0 : vector<1x8x8xf32> to vector<8x8xf32>
    %c0_2 = arith.constant 0 : index
    %c0_3 = arith.constant 0 : index
    %2 = vector.load %arg3[%c0_2, %c0_3] : memref<1x8xf32, #tpu.memory_space<vmem>>, vector<1x8xf32>
    %3 = vector.broadcast %2 : vector<1x8xf32> to vector<8x8xf32>
    %4 = arith.mulf %1, %3 : vector<8x8xf32>
    %c0_4 = arith.constant 0 : index
    %c0_5 = arith.constant 0 : index
    %5 = vector.load %arg4[%c0_4, %c0_5] : memref<1x8xf32, #tpu.memory_space<vmem>>, vector<1x8xf32>
    %6 = vector.broadcast %5 : vector<1x8xf32> to vector<8x8xf32>
    %7 = arith.addf %4, %6 : vector<8x8xf32>
    %cst = arith.constant 0.000000e+00 : f32
    %8 = vector.broadcast %cst : f32 to vector<8x8xf32>
    %9 = arith.maximumf %7, %8 : vector<8x8xf32>
    %c0_6 = arith.constant 0 : index
    %c0_7 = arith.constant 0 : index
    %10 = vector.load %arg5[%c0_6, %c0_7] : memref<8x16xf32, #tpu.memory_space<vmem>>, vector<8x16xf32>
    %cst_8 = arith.constant dense<0.000000e+00> : vector<8x16xf32>
    %11 = tpu.matmul %9, %10, %cst_8 {dimension_numbers = #tpu.dot_dimension_numbers<[1], [0], [0], [1], [0, 0, 1, 1], [], []>} : vector<8x8xf32>, vector<8x16xf32>, vector<8x16xf32> -> vector<8x16xf32>
    %c0_9 = arith.constant 0 : index
    %c0_10 = arith.constant 0 : index
    %12 = vector.load %arg6[%c0_9, %c0_10] : memref<1x16xf32, #tpu.memory_space<vmem>>, vector<1x16xf32>
    %13 = vector.broadcast %12 : vector<1x16xf32> to vector<8x16xf32>
    %14 = arith.addf %11, %13 : vector<8x16xf32>
    %c0_11 = arith.constant 0 : index
    %c0_12 = arith.constant 0 : index
    %c0_13 = arith.constant 0 : index
    %15 = vector.load %arg1[%c0_11, %c0_12, %c0_13] : memref<1x8x16xf32, #tpu.memory_space<vmem>>, vector<1x8x16xf32>
    %16 = vector.shape_cast %15 : vector<1x8x16xf32> to vector<8x16xf32>
    %17 = arith.addf %16, %14 : vector<8x16xf32>
    %c0_14 = arith.constant 0 : index
    %c0_15 = arith.constant 0 : index
    %c0_16 = arith.constant 0 : index
    %18 = vector.load %arg7[%c0_14, %c0_15, %c0_16] : memref<1x8x16xf32, #tpu.memory_space<vmem>>, vector<1x8x16xf32>
    %19 = vector.shape_cast %18 : vector<1x8x16xf32> to vector<8x16xf32>
    %20 = vector.shape_cast %17 : vector<8x16xf32> to vector<1x8x16xf32>
    tpu.vector_store %arg7[%c0_14, %c0_15, %c0_16], %20 {strides = array<i32>} : memref<1x8x16xf32, #tpu.memory_space<vmem>>, vector<1x8x16xf32>,
    %cst_17 = arith.constant dense<0.000000e+00> : vector<8xf32>
    %21 = vector.multi_reduction <add>, %17, %cst_17 [1] : vector<8x16xf32> to vector<8xf32>
    %22 = vector.shape_cast %21 : vector<8xf32> to vector<8x1xf32>
    %cst_18 = arith.constant 1.600000e+01 : f32
    %23 = vector.broadcast %cst_18 : f32 to vector<8x1xf32>
    %24 = arith.divf %22, %23 : vector<8x1xf32>
    %c0_19 = arith.constant 0 : index
    %c0_20 = arith.constant 0 : index
    %c0_21 = arith.constant 0 : index
    %25 = vector.load %arg8[%c0_19, %c0_20, %c0_21] : memref<1x8x1xf32, #tpu.memory_space<vmem>>, vector<1x8x1xf32>
    %26 = vector.shape_cast %25 : vector<1x8x1xf32> to vector<8x1xf32>
    %27 = vector.shape_cast %24 : vector<8x1xf32> to vector<1x8x1xf32>
    tpu.vector_store %arg8[%c0_19, %c0_20, %c0_21], %27 {strides = array<i32>} : memref<1x8x1xf32, #tpu.memory_space<vmem>>, vector<1x8x1xf32>,
    %28 = vector.broadcast %24 : vector<8x1xf32> to vector<8x16xf32>
    %29 = arith.subf %17, %28 : vector<8x16xf32>
    %30 = arith.mulf %29, %29 : vector<8x16xf32>
    %cst_22 = arith.constant dense<0.000000e+00> : vector<8xf32>
    %31 = vector.multi_reduction <add>, %30, %cst_22 [1] : vector<8x16xf32> to vector<8xf32>
    %32 = vector.shape_cast %31 : vector<8xf32> to vector<8x1xf32>
    %cst_23 = arith.constant 1.600000e+01 : f32
    %33 = vector.broadcast %cst_23 : f32 to vector<8x1xf32>
    %34 = arith.divf %32, %33 : vector<8x1xf32>
    %c0_24 = arith.constant 0 : index
    %c0_25 = arith.constant 0 : index
    %c0_26 = arith.constant 0 : index
    %35 = vector.load %arg9[%c0_24, %c0_25, %c0_26] : memref<1x8x1xf32, #tpu.memory_space<vmem>>, vector<1x8x1xf32>
    %36 = vector.shape_cast %35 : vector<1x8x1xf32> to vector<8x1xf32>
    %37 = vector.shape_cast %34 : vector<8x1xf32> to vector<1x8x1xf32>
    tpu.vector_store %arg9[%c0_24, %c0_25, %c0_26], %37 {strides = array<i32>} : memref<1x8x1xf32, #tpu.memory_space<vmem>>, vector<1x8x1xf32>,
    return
  }
  func.func @transform_0(%arg0: i32) -> (i32, i32, i32) {
    %c0_i32 = arith.constant 0 : i32
    %c0_i32_0 = arith.constant 0 : i32
    %c0_i32_1 = arith.constant 0 : i32
    return %arg0, %c0_i32, %c0_i32_0 : i32, i32, i32
  }
  func.func @transform_1(%arg0: i32) -> (i32, i32, i32) {
    %c0_i32 = arith.constant 0 : i32
    %c0_i32_0 = arith.constant 0 : i32
    %c0_i32_1 = arith.constant 0 : i32
    return %arg0, %c0_i32, %c0_i32_0 : i32, i32, i32
  }
  func.func @transform_2(%arg0: i32) -> (i32, i32) {
    %c0_i32 = arith.constant 0 : i32
    %c0_i32_0 = arith.constant 0 : i32
    %c0_i32_1 = arith.constant 0 : i32
    return %c0_i32, %c0_i32_0 : i32, i32
  }
  func.func @transform_3(%arg0: i32) -> (i32, i32) {
    %c0_i32 = arith.constant 0 : i32
    %c0_i32_0 = arith.constant 0 : i32
    %c0_i32_1 = arith.constant 0 : i32
    return %c0_i32, %c0_i32_0 : i32, i32
  }
  func.func @transform_4(%arg0: i32) -> (i32, i32) {
    %c0_i32 = arith.constant 0 : i32
    %c0_i32_0 = arith.constant 0 : i32
    %c0_i32_1 = arith.constant 0 : i32
    return %c0_i32, %c0_i32_0 : i32, i32
  }
  func.func @transform_5(%arg0: i32) -> (i32, i32) {
    %c0_i32 = arith.constant 0 : i32
    %c0_i32_0 = arith.constant 0 : i32
    %c0_i32_1 = arith.constant 0 : i32
    return %c0_i32, %c0_i32_0 : i32, i32
  }
  func.func @transform_6(%arg0: i32) -> (i32, i32, i32) {
    %c0_i32 = arith.constant 0 : i32
    %c0_i32_0 = arith.constant 0 : i32
    %c0_i32_1 = arith.constant 0 : i32
    return %arg0, %c0_i32, %c0_i32_0 : i32, i32, i32
  }
  func.func @transform_7(%arg0: i32) -> (i32, i32, i32) {
    %c0_i32 = arith.constant 0 : i32
    %c0_i32_0 = arith.constant 0 : i32
    %c0_i32_1 = arith.constant 0 : i32
    return %arg0, %c0_i32, %c0_i32_0 : i32, i32, i32
  }
  func.func @transform_8(%arg0: i32) -> (i32, i32, i32) {
    %c0_i32 = arith.constant 0 : i32
    %c0_i32_0 = arith.constant 0 : i32
    %c0_i32_1 = arith.constant 0 : i32
    return %arg0, %c0_i32, %c0_i32_0 : i32, i32, i32
  }
}

module attributes {stable_mosaic.version = 11 : i64} {
  func.func @_conv3_kernel(%arg0: i32, %arg1: memref<1x8x16xf32, #tpu.memory_space<vmem>>, %arg2: memref<1x8x16xf32, #tpu.memory_space<vmem>>, %arg3: memref<1x8x1xf32, #tpu.memory_space<vmem>>, %arg4: memref<1x8x1xf32, #tpu.memory_space<vmem>>, %arg5: memref<8x8xf32, #tpu.memory_space<vmem>>, %arg6: memref<8x1xf32, #tpu.memory_space<vmem>>, %arg7: memref<1x8x16xf32, #tpu.memory_space<vmem>>) attributes {dimension_semantics = [#tpu.dimension_semantics<parallel>], iteration_bounds = array<i64: 2>, scalar_prefetch = 0 : i64, scratch_operands = 0 : i64, tpu.core_type = #tpu.core_type<tc>, window_params = [{transform_indices = @transform_0, window_bounds = array<i64: 1, 8, 16>}, {transform_indices = @transform_1, window_bounds = array<i64: 1, 8, 16>}, {transform_indices = @transform_2, window_bounds = array<i64: 1, 8, 1>}, {transform_indices = @transform_3, window_bounds = array<i64: 1, 8, 1>}, {pipeline_mode = #tpu.pipeline_mode<synchronous>, transform_indices = @transform_4, window_bounds = array<i64: 8, 8>}, {pipeline_mode = #tpu.pipeline_mode<synchronous>, transform_indices = @transform_5, window_bounds = array<i64: 8, 1>}, {transform_indices = @transform_6, window_bounds = array<i64: 1, 8, 16>}]} {
    %c0 = arith.constant 0 : index
    %c0_0 = arith.constant 0 : index
    %c0_1 = arith.constant 0 : index
    %0 = vector.load %arg1[%c0, %c0_0, %c0_1] : memref<1x8x16xf32, #tpu.memory_space<vmem>>, vector<1x8x16xf32>
    %1 = vector.shape_cast %0 : vector<1x8x16xf32> to vector<8x16xf32>
    %c0_2 = arith.constant 0 : index
    %c0_3 = arith.constant 0 : index
    %c0_4 = arith.constant 0 : index
    %2 = vector.load %arg3[%c0_2, %c0_3, %c0_4] : memref<1x8x1xf32, #tpu.memory_space<vmem>>, vector<1x8x1xf32>
    %3 = vector.shape_cast %2 : vector<1x8x1xf32> to vector<8x1xf32>
    %4 = vector.broadcast %3 : vector<8x1xf32> to vector<8x16xf32>
    %5 = arith.mulf %1, %4 : vector<8x16xf32>
    %c0_5 = arith.constant 0 : index
    %c0_6 = arith.constant 0 : index
    %c0_7 = arith.constant 0 : index
    %6 = vector.load %arg4[%c0_5, %c0_6, %c0_7] : memref<1x8x1xf32, #tpu.memory_space<vmem>>, vector<1x8x1xf32>
    %7 = vector.shape_cast %6 : vector<1x8x1xf32> to vector<8x1xf32>
    %8 = vector.broadcast %7 : vector<8x1xf32> to vector<8x16xf32>
    %9 = arith.addf %5, %8 : vector<8x16xf32>
    %cst = arith.constant 0.000000e+00 : f32
    %10 = vector.broadcast %cst : f32 to vector<8x16xf32>
    %11 = arith.maximumf %9, %10 : vector<8x16xf32>
    %c0_8 = arith.constant 0 : index
    %c0_9 = arith.constant 0 : index
    %12 = vector.load %arg5[%c0_8, %c0_9] : memref<8x8xf32, #tpu.memory_space<vmem>>, vector<8x8xf32>
    %cst_10 = arith.constant dense<0.000000e+00> : vector<8x16xf32>
    %13 = tpu.matmul %12, %11, %cst_10 {dimension_numbers = #tpu.dot_dimension_numbers<[1], [0], [0], [1], [0, 0, 1, 1], [], []>} : vector<8x8xf32>, vector<8x16xf32>, vector<8x16xf32> -> vector<8x16xf32>
    %c0_11 = arith.constant 0 : index
    %c0_12 = arith.constant 0 : index
    %14 = vector.load %arg6[%c0_11, %c0_12] : memref<8x1xf32, #tpu.memory_space<vmem>>, vector<8x1xf32>
    %15 = vector.broadcast %14 : vector<8x1xf32> to vector<8x16xf32>
    %16 = arith.addf %13, %15 : vector<8x16xf32>
    %c0_13 = arith.constant 0 : index
    %c0_14 = arith.constant 0 : index
    %c0_15 = arith.constant 0 : index
    %17 = vector.load %arg2[%c0_13, %c0_14, %c0_15] : memref<1x8x16xf32, #tpu.memory_space<vmem>>, vector<1x8x16xf32>
    %18 = vector.shape_cast %17 : vector<1x8x16xf32> to vector<8x16xf32>
    %19 = arith.addf %16, %18 : vector<8x16xf32>
    %c0_16 = arith.constant 0 : index
    %c0_17 = arith.constant 0 : index
    %c0_18 = arith.constant 0 : index
    %20 = vector.load %arg7[%c0_16, %c0_17, %c0_18] : memref<1x8x16xf32, #tpu.memory_space<vmem>>, vector<1x8x16xf32>
    %21 = vector.shape_cast %20 : vector<1x8x16xf32> to vector<8x16xf32>
    %22 = vector.shape_cast %19 : vector<8x16xf32> to vector<1x8x16xf32>
    tpu.vector_store %arg7[%c0_16, %c0_17, %c0_18], %22 {strides = array<i32>} : memref<1x8x16xf32, #tpu.memory_space<vmem>>, vector<1x8x16xf32>,
    return
  }
  func.func @transform_0(%arg0: i32) -> (i32, i32, i32) {
    %c0_i32 = arith.constant 0 : i32
    %c0_i32_0 = arith.constant 0 : i32
    %c0_i32_1 = arith.constant 0 : i32
    return %arg0, %c0_i32, %c0_i32_0 : i32, i32, i32
  }
  func.func @transform_1(%arg0: i32) -> (i32, i32, i32) {
    %c0_i32 = arith.constant 0 : i32
    %c0_i32_0 = arith.constant 0 : i32
    %c0_i32_1 = arith.constant 0 : i32
    return %arg0, %c0_i32, %c0_i32_0 : i32, i32, i32
  }
  func.func @transform_2(%arg0: i32) -> (i32, i32, i32) {
    %c0_i32 = arith.constant 0 : i32
    %c0_i32_0 = arith.constant 0 : i32
    %c0_i32_1 = arith.constant 0 : i32
    return %arg0, %c0_i32, %c0_i32_0 : i32, i32, i32
  }
  func.func @transform_3(%arg0: i32) -> (i32, i32, i32) {
    %c0_i32 = arith.constant 0 : i32
    %c0_i32_0 = arith.constant 0 : i32
    %c0_i32_1 = arith.constant 0 : i32
    return %arg0, %c0_i32, %c0_i32_0 : i32, i32, i32
  }
  func.func @transform_4(%arg0: i32) -> (i32, i32) {
    %c0_i32 = arith.constant 0 : i32
    %c0_i32_0 = arith.constant 0 : i32
    %c0_i32_1 = arith.constant 0 : i32
    return %c0_i32, %c0_i32_0 : i32, i32
  }
  func.func @transform_5(%arg0: i32) -> (i32, i32) {
    %c0_i32 = arith.constant 0 : i32
    %c0_i32_0 = arith.constant 0 : i32
    %c0_i32_1 = arith.constant 0 : i32
    return %c0_i32, %c0_i32_0 : i32, i32
  }
  func.func @transform_6(%arg0: i32) -> (i32, i32, i32) {
    %c0_i32 = arith.constant 0 : i32
    %c0_i32_0 = arith.constant 0 : i32
    %c0_i32_1 = arith.constant 0 : i32
    return %arg0, %c0_i32, %c0_i32_0 : i32, i32, i32
  }
}

</mosaic_0001>

<bundles_post_ra>
// kernel: oafilter_bottleneck.5
= control target key start
LH: loop header
LB: loop body
LE: loop exit
PB: predicated region body
PF: predicated region fallthrough
CT: control target
= control target key end

     0   :  { %s603_s24 = smov 0   ;;  %s646_s0 = inlined_call_operand.vmem [shape: f32[2,8,16], index: 0, kind: input, shape index: {}]   ;;  %s647_s1 = inlined_call_operand.vmem [shape: f32[1,16], index: 1, kind: input, shape index: {}]   ;;  %s648_s2 = inlined_call_operand.vmem [shape: f32[1,16], index: 2, kind: input, shape index: {}]   ;;  %s649_s3 = inlined_call_operand.vmem [shape: f32[16,8], index: 3, kind: input, shape index: {}]   ;;  %s650_s4 = inlined_call_operand.vmem [shape: f32[1,8], index: 4, kind: input, shape index: {}]   ;;  %s651_s5 = inlined_call_operand.vmem [shape: f32[2,8,8], index: 5, kind: output, shape index: {0}]   ;;  %s652_s6 = inlined_call_operand.vmem [shape: f32[2,1,8], index: 6, kind: output, shape index: {1}]   ;;  %s653_s7 = inlined_call_operand.vmem [shape: f32[2,1,8], index: 7, kind: output, shape index: {2}]  }
   0x1 LB: > { %s515_s25 = sadd.s32 4294967295, %s558_s24   ;;  %p519_p0 = scmp.ge.s32.totalorder %s558_s24, 1  ;;  %s558_s24 = sphi %s603_s24, %s18_s24  }
   0x2   : > { %p241_p1 = scmp.lt.s32.totalorder %s558_s24, 3 }
   0x4   : > { %p242_p2 = pnand %p519_p0, %p241_p1 }
   0x5   : > { %v309_v0 = vld [vmem:[%s649_s3] sm:$0xff] (!%p242_p2)  ;;  %v310_v1 = vld [vmem:[%s649_s3 + $0x8] sm:$0xff] (!%p242_p2)  ;;  %p277_p3 = scmp.lt.s32.totalorder (!%p242_p2), %s515_s25, 1  ;;  %v560_v2 = vmov (!%p242_p2), 0.0|0.0   ;;  %vm561_vm0 = vmmov (!%p242_p2), 0   ;;  %v562_v4 = vmov (!%p242_p2), 0.0  }
   0x6   : > { %245 = sbr.rel (%p242_p2) target bundleno = 253 (0xfd), region = 40  ;;  %538 = vmatprep.subr.bf16.mxu0 (!%p242_p2), %v560_v2  ;;  %v539_v3 = vpack.c.bf16 (!%p242_p2), %v310_v1, %v309_v0  ;;  %535 = vmatprep.mubr.msk.f32.mxu0 (!%p242_p2), %vm561_vm0, %v562_v4  ;;  %v522_v5 = vld [vmem:[%s647_s1] ss:$0 sm:$0xff] (!%p242_p2)  ;;  %vm318_vm1 = vcmask (!%p242_p2), 130048   ;;  %vm392_vm2 = vcmask (!%p242_p2), 64512   ;;  %vm401_vm3 = vcmask (!%p242_p2), 57344  }
   0x7   : > { %v523_v7 = vld [vmem:[%s648_s2] ss:$0 sm:$0xff] (!%p242_p2) }
   0x8   : > { %540 = vmatpush3.bf16.msra.mxu0 (!%p242_p2), %v539_v3  ;;  %v524_v11 = vld [vmem:[%s650_s4] ss:$0 sm:$0xff] (!%p242_p2) }
   0xd   : > { %s655_s25 = smov (!%p277_p3, %s515_s25), 1 }
   0xe   : > { %s520_s30 = sshll.u32 %s655_s25, 3  ;;  %s287_s22 = scalar_lea.vmem %s652_s6, %s655_s25 }
   0xf   : > { %s280_s12 = scalar_lea.vmem %s646_s0, %s520_s30  ;;  %s284_s19 = scalar_lea.vmem %s651_s5, %s520_s30 }
  0x10   : > { %v291_v6 = vld [vmem:[%s280_s12] sm:$0xff]  ;;  %s290_s27 = scalar_lea.vmem %s653_s7, %s655_s25 }
  0x11   : > { %v299_v8 = vmul.f32 %v522_v5, %v291_v6 }
  0x13   : > { %v307_v9 = vadd.f32 %v523_v7, %v299_v8 }
  0x15   : > { %v308_v10 = vmax.f32 %v307_v9, 0.0 }
  0x17   : > { %536 = vmatmul.mubr.msk.f32.vlgmr.msra.gmra.mrb[0].mxu0 %vm318_vm1, %v308_v10 }
  0xea   : > { %v388_v12 = vpop.f32.mrb[0].mxu0 }
  0xeb   : > { %v389_v13 = vadd.f32 %v524_v11, %v388_v12  ;;  %v537_v14 = vpop.f32.mrb[1].mxu0 }
  0xed   : > { %393 = vst.msk [vmem:[%s284_s19] sm:$0xff] %vm392_vm2, %v389_v13  ;;  %v394_v15 = vsel %vm392_vm2, %v389_v13, 0.0  ;;  %v403_v16 = vmul.f32 %v389_v13, %v389_v13 }
  0xee   : > { %v395_v17 = vrot.slane %v394_v15, 4 }
  0xef   : > { %v404_v18 = vsel %vm392_vm2, %v403_v16, 0.0 }
  0xf0   : > { %v396_v19 = vadd.f32 %v395_v17, %v394_v15  ;;  %v405_v20 = vrot.slane %v404_v18, 4 }
  0xf2   : > { %v397_v21 = vrot.slane %v396_v19, 2  ;;  %v406_v22 = vadd.f32 %v405_v20, %v404_v18 }
  0xf4   : > { %v398_v23 = vadd.f32 %v397_v21, %v396_v19  ;;  %v407_v24 = vrot.slane %v406_v22, 2 }
  0xf6   : > { %v399_v25 = vrot.slane %v398_v23, 1  ;;  %v408_v26 = vadd.f32 %v407_v24, %v406_v22 }
  0xf8   : > { %v400_v27 = vadd.f32 %v399_v25, %v398_v23  ;;  %v409_v28 = vrot.slane %v408_v26, 1 }
  0xfa   : > { %402 = vst.msk [vmem:[%s287_s22] sm:$0x1] %vm401_vm3, %v400_v27  ;;  %v410_v29 = vadd.f32 %v409_v28, %v408_v26 }
  0xfc   : > { %411 = vst.msk [vmem:[%s290_s27] sm:$0x1] %vm401_vm3, %v410_v29 }
  0xfd PF: > { %s18_s24 = sadd.s32 1, %s558_s24  }
  0xfe   : > { %p15_p4 = scmp.ge.s32.totalorder %s18_s24, 4  }
 0x100   :  { %17 = sbr.rel (!%p15_p4) target bundleno = 1 (0x1), region = 94 }

// kernel: oafilter_bottleneck.4
= control target key start
LH: loop header
LB: loop body
LE: loop exit
PB: predicated region body
PF: predicated region fallthrough
CT: control target
= control target key end

     0   :  { %s652_s24 = smov 0   ;;  %s698_s0 = inlined_call_operand.vmem [shape: f32[2,8,16], index: 0, kind: input, shape index: {}]   ;;  %s699_s1 = inlined_call_operand.vmem [shape: f32[2,8,1], index: 1, kind: input, shape index: {}]   ;;  %s700_s2 = inlined_call_operand.vmem [shape: f32[2,8,1], index: 2, kind: input, shape index: {}]   ;;  %s701_s3 = inlined_call_operand.vmem [shape: f32[8,8], index: 3, kind: input, shape index: {}]   ;;  %s702_s4 = inlined_call_operand.vmem [shape: f32[8,1], index: 4, kind: input, shape index: {}]   ;;  %s703_s5 = inlined_call_operand.vmem [shape: f32[2,8,16], index: 5, kind: output, shape index: {0}]   ;;  %s704_s6 = inlined_call_operand.vmem [shape: f32[2,1,16], index: 6, kind: output, shape index: {1}]   ;;  %s705_s7 = inlined_call_operand.vmem [shape: f32[2,1,16], index: 7, kind: output, shape index: {2}]  }
   0x1 LB: > { %s569_s25 = sadd.s32 4294967295, %s607_s24   ;;  %p573_p0 = scmp.ge.s32.totalorder %s607_s24, 1  ;;  %s607_s24 = sphi %s652_s24, %s18_s24  }
   0x2   : > { %p259_p1 = scmp.lt.s32.totalorder %s607_s24, 3 }
   0x4   : > { %p260_p2 = pnand %p573_p0, %p259_p1 }
   0x5   : > { %p303_p3 = scmp.lt.s32.totalorder (!%p260_p2), %s569_s25, 1  ;;  %v609_v0 = vmov (!%p260_p2), 0   ;;  %v610_v3 = vmov (!%p260_p2), 0.0   ;;  %vm611_vm0 = vmmov (!%p260_p2), 0   ;;  %v342_v4 = vld [vmem:[%s702_s4] sm:$0xff] (!%p260_p2)  ;;  %vm348_vm1 = vcmask (!%p260_p2), 64512  }
   0x6   : > { %263 = sbr.rel (%p260_p2) target bundleno = 384 (0x180), region = 40  ;;  %599 = vset.pattern.permute.xlu0 (!%p260_p2), %v609_v0  ;;  %600 = vset.pattern.permute.xlu1 (!%p260_p2), %v609_v0  ;;  %v341_v11 = vld [vmem:[%s701_s3] sm:$0xff] (!%p260_p2)  ;;  %vm422_vm2 = vcmask (!%p260_p2), 130048   ;;  %vm431_vm3 = vcmask (!%p260_p2), 122880  }
   0x7   : > { %583 = vmatprep.subr.mxu0 (!%p260_p2), %v610_v3  ;;  %585 = vmatprep.mubr.msk.f32.mxu0 (!%p260_p2), %vm611_vm0, %v610_v3 }
   0x8   : > { %345 = vperm.xlu1 (!%p260_p2), %600, %v342_v4  }
   0xd   : > { %s707_s25 = smov (!%p303_p3, %s569_s25), 1 }
   0xe   : > { %s663_s26 = sshll.u32 %s707_s25, 3  ;;  %s321_s22 = scalar_lea.vmem %s704_s6, %s707_s25 }
   0xf   : > { %s310_s29 = scalar_lea.vmem %s699_s1, %s663_s26  ;;  %s314_s9 = scalar_lea.vmem %s700_s2, %s663_s26 }
  0x10   : > { %v326_v1 = vld [vmem:[%s310_s29] sm:$0xff]  ;;  %s306_s14 = scalar_lea.vmem %s698_s0, %s663_s26  ;;  %s318_s19 = scalar_lea.vmem %s703_s5, %s663_s26 }
  0x11   : > { %329 = vperm.xlu0 %599, %v326_v1   ;;  %v333_v2 = vld [vmem:[%s314_s9] sm:$0xff]  ;;  %s324_s27 = scalar_lea.vmem %s705_s7, %s707_s25 }
  0x12   : > { %v325_v6 = vld [vmem:[%s306_s14] sm:$0xff] }
  0x15   : > { %336 = vperm.xlu0 %599, %v333_v2  }
  0x87   : > { %v346_v12 = vpop.permute.xlu1 %345 }
  0x90   : > { %v330_v5 = vpop.permute.xlu0 %329 }
  0x91   : > { %v332_v7 = vmul.f32 %v330_v5, %v325_v6 }
  0x94   : > { %v337_v8 = vpop.permute.xlu0 %336 }
  0x95   : > { %v339_v9 = vadd.f32 %v337_v8, %v332_v7 }
  0x97   : > { %v340_v10 = vmax.f32 %v339_v9, 0.0 }
  0x99   : > { %584 = vmatpush3.msra.mxu0 %v340_v10 }
  0x9a   : > { %586 = vmatmul.mubr.msk.f32.vlgmr.msra.gmra.mrb[0].mxu0 %vm348_vm1, %v341_v11 }
 0x16d   : > { %v418_v13 = vpop.f32.mrb[0].mxu0 }
 0x16e   : > { %v419_v14 = vadd.f32 %v418_v13, %v346_v12  ;;  %v587_v15 = vpop.f32.mrb[1].mxu0 }
 0x170   : > { %423 = vst.msk [vmem:[%s318_s19] sm:$0xff] %vm422_vm2, %v419_v14  ;;  %v424_v16 = vsel %vm422_vm2, %v419_v14, 0.0  ;;  %v433_v17 = vmul.f32 %v419_v14, %v419_v14 }
 0x171   : > { %v425_v18 = vrot.slane %v424_v16, 4 }
 0x172   : > { %v434_v19 = vsel %vm422_vm2, %v433_v17, 0.0 }
 0x173   : > { %v426_v20 = vadd.f32 %v425_v18, %v424_v16  ;;  %v435_v21 = vrot.slane %v434_v19, 4 }
 0x175   : > { %v427_v22 = vrot.slane %v426_v20, 2  ;;  %v436_v23 = vadd.f32 %v435_v21, %v434_v19 }
 0x177   : > { %v428_v24 = vadd.f32 %v427_v22, %v426_v20  ;;  %v437_v25 = vrot.slane %v436_v23, 2 }
 0x179   : > { %v429_v26 = vrot.slane %v428_v24, 1  ;;  %v438_v27 = vadd.f32 %v437_v25, %v436_v23 }
 0x17b   : > { %v430_v28 = vadd.f32 %v429_v26, %v428_v24  ;;  %v439_v29 = vrot.slane %v438_v27, 1 }
 0x17d   : > { %432 = vst.msk [vmem:[%s321_s22] sm:$0x1] %vm431_vm3, %v430_v28  ;;  %v440_v30 = vadd.f32 %v439_v29, %v438_v27 }
 0x17f   : > { %441 = vst.msk [vmem:[%s324_s27] sm:$0x1] %vm431_vm3, %v440_v30 }
 0x180 PF: > { %s18_s24 = sadd.s32 1, %s607_s24  }
 0x181   : > { %p15_p4 = scmp.ge.s32.totalorder %s18_s24, 4  }
 0x183   :  { %17 = sbr.rel (!%p15_p4) target bundleno = 1 (0x1), region = 100 }

// kernel: oafilter_bottleneck.6
= control target key start
LH: loop header
LB: loop body
LE: loop exit
PB: predicated region body
PF: predicated region fallthrough
CT: control target
= control target key end

     0   :  { %s672_s27 = smov 0   ;;  %s717_s0 = inlined_call_operand.vmem [shape: f32[2,8,16], index: 0, kind: input, shape index: {}]   ;;  %s718_s1 = inlined_call_operand.vmem [shape: f32[2,8,8], index: 1, kind: input, shape index: {}]   ;;  %s719_s2 = inlined_call_operand.vmem [shape: f32[1,8], index: 2, kind: input, shape index: {}]   ;;  %s720_s3 = inlined_call_operand.vmem [shape: f32[1,8], index: 3, kind: input, shape index: {}]   ;;  %s721_s4 = inlined_call_operand.vmem [shape: f32[8,16], index: 4, kind: input, shape index: {}]   ;;  %s722_s5 = inlined_call_operand.vmem [shape: f32[1,16], index: 5, kind: input, shape index: {}]   ;;  %s723_s6 = inlined_call_operand.vmem [shape: f32[2,8,16], index: 6, kind: output, shape index: {0}]   ;;  %s724_s7 = inlined_call_operand.vmem [shape: f32[2,8,1], index: 7, kind: output, shape index: {1}]   ;;  %s725_s8 = inlined_call_operand.vmem [shape: f32[2,8,1], index: 8, kind: output, shape index: {2}]  }
   0x1 LB: > { %s584_s28 = sadd.s32 4294967295, %s623_s27   ;;  %p588_p0 = scmp.ge.s32.totalorder %s623_s27, 1  ;;  %s623_s27 = sphi %s672_s27, %s19_s27  }
   0x2   : > { %p275_p1 = scmp.lt.s32.totalorder %s623_s27, 3 }
   0x4   : > { %p276_p2 = pnand %p588_p0, %p275_p1 }
   0x5   : > { %v357_v0 = vld [vmem:[%s721_s4] sm:$0xff] (!%p276_p2)  ;;  %p319_p3 = scmp.lt.s32.totalorder (!%p276_p2), %s584_s28, 1  ;;  %v625_v1 = vmov (!%p276_p2), 0.0   ;;  %vm626_vm0 = vmmov (!%p276_p2), 0   ;;  %vm365_vm1 = vcmask (!%p276_p2), 64512   ;;  %vm441_vm2 = vcmask (!%p276_p2), 130048  }
   0x6   : > { %279 = sbr.rel (%p276_p2) target bundleno = 534 (0x216), region = 44  ;;  %602 = vmatprep.subr.mxu0 (!%p276_p2), %v625_v1  ;;  %604 = vmatprep.mubr.msk.f32.mxu0 (!%p276_p2), %vm626_vm0, %v625_v1  ;;  %v594_v2 = vld [vmem:[%s719_s2] ss:$0 sm:$0xff] (!%p276_p2)  ;;  %vm448_vm3 = vcmask (!%p276_p2), 7168  }
   0x7   : > { %603 = vmatpush3.msra.mxu0 (!%p276_p2), %v357_v0  ;;  %v595_v4 = vld [vmem:[%s720_s3] ss:$0 sm:$0xff] (!%p276_p2) }
   0x8   : > { %v596_v8 = vld [vmem:[%s722_s5] ss:$0 sm:$0xff] (!%p276_p2) }
   0xd   : > { %s727_s28 = smov (!%p319_p3, %s584_s28), 1 }
   0xe   : > { %s683_s9 = sshll.u32 %s727_s28, 3 }
   0xf   : > { %s326_s14 = scalar_lea.vmem %s718_s1, %s683_s9  ;;  %s322_s19 = scalar_lea.vmem %s717_s0, %s683_s9 }
  0x10   : > { %v339_v3 = vld [vmem:[%s326_s14] sm:$0xff]  ;;  %s330_s24 = scalar_lea.vmem %s723_s6, %s683_s9  ;;  %s334_s28 = scalar_lea.vmem %s724_s7, %s683_s9 }
  0x11   : > { %v347_v5 = vmul.f32 %v594_v2, %v339_v3  ;;  %v439_v10 = vld [vmem:[%s322_s19] sm:$0xff]  ;;  %s338_s10 = scalar_lea.vmem %s725_s8, %s683_s9 }
  0x13   : > { %v355_v6 = vadd.f32 %v595_v4, %v347_v5 }
  0x15   : > { %v356_v7 = vmax.f32 %v355_v6, 0.0 }
  0x17   : > { %605 = vmatmul.mubr.msk.f32.vlgmr.msra.gmra.mrb[0].mxu0 %vm365_vm1, %v356_v7 }
  0xea   : > { %v435_v9 = vpop.f32.mrb[0].mxu0 }
  0xeb   : > { %v436_v11 = vadd.f32 %v596_v8, %v435_v9  ;;  %v606_v12 = vpop.f32.mrb[1].mxu0 }
  0xed   : > { %v440_v13 = vadd.f32 %v439_v10, %v436_v11 }
  0xef   : > { %v443_v14 = vsel %vm441_vm2, %v440_v13, 0.0  ;;  %442 = vst.msk [vmem:[%s330_s24] sm:$0xff] %vm441_vm2, %v440_v13 }
  0xf0   : > { %444 = vadd.xlane.f32.xlu0 %v443_v14 }
 0x17d   : > { %v445_v15 = vpop.xlane.xlu0 %444 }
 0x17e   : > { %v447_v16 = vmul.f32 0.0625, %v445_v15 }
 0x180   : > { %449 = vst.msk [vmem:[%s334_s28] sm:$0xff] %vm448_vm3, %v447_v16  ;;  %v450_v17 = vsub.f32 %v440_v13, %v447_v16 }
 0x182   : > { %v451_v18 = vmul.f32 %v450_v17, %v450_v17 }
 0x184   : > { %v452_v19 = vsel %vm441_vm2, %v451_v18, 0.0 }
 0x185   : > { %453 = vadd.xlane.f32.xlu0 %v452_v19 }
 0x212   : > { %v454_v20 = vpop.xlane.xlu0 %453 }
 0x213   : > { %v455_v21 = vmul.f32 0.0625, %v454_v20 }
 0x215   : > { %456 = vst.msk [vmem:[%s338_s10] sm:$0xff] %vm448_vm3, %v455_v21 }
 0x216 PF: > { %s19_s27 = sadd.s32 1, %s623_s27  }
 0x217   : > { %p16_p4 = scmp.ge.s32.totalorder %s19_s27, 4  }
 0x219   :  { %18 = sbr.rel (!%p16_p4) target bundleno = 1 (0x1), region = 101 }

// kernel: oafilter_bottleneck.7
= control target key start
LH: loop header
LB: loop body
LE: loop exit
PB: predicated region body
PF: predicated region fallthrough
CT: control target
= control target key end

     0   :  { %11 = vsyncpa [#allocation3], 0  ;;  %s797_s0 = inlined_call_operand.vmem [shape: f32[2,8,16], index: 0, kind: input, shape index: {}]   ;;  %s798_s1 = inlined_call_operand.vmem [shape: f32[2,8,16], index: 1, kind: input, shape index: {}]   ;;  %s799_s2 = inlined_call_operand.vmem [shape: f32[2,8,1], index: 2, kind: input, shape index: {}]   ;;  %s800_s3 = inlined_call_operand.vmem [shape: f32[2,8,1], index: 3, kind: input, shape index: {}]   ;;  %s801_s4 = inlined_call_operand.vmem [shape: f32[8,8], index: 4, kind: input, shape index: {}]   ;;  %s802_s5 = inlined_call_operand.vmem [shape: f32[8,1], index: 5, kind: input, shape index: {}]   ;;  %s803_s6 = inlined_call_operand.hbm [shape: f32[2,8,16], index: 6, kind: output, shape index: {}]  }
   0x1   :  { %13 = vsyncpa [#allocation3 + $0x1], 0  ;;  %s676_s21 = smov 0   ;;  %s678_s22 = smov 0  }
   0x2   :  { %s680_s23 = smov 0   ;;  %s682_s24 = smov 0  }
   0x3 LB: > { %s697_s25 = sadd.s32 4294967295, %s635_s24   ;;  %s508_s26 = sadd.s32 4294967294, %s635_s24   ;;  %s635_s24 = sphi %s682_s24, %s809_s24   ;;  %s631_s23 = sphi %s680_s23, %s808_s23   ;;  %s627_s22 = sphi %s678_s22, %s807_s22   ;;  %s623_s21 = sphi %s676_s21, %s806_s21  }
   0x4   : > { %s701_s27 = sadd.s32 1, %s635_s24   ;;  %s172_s28 = sadd.s32 1, %s631_s23 }
   0x5   : > { %s169_s29 = ssub.s32 %s635_s24, %s701_s27  ;;  %p182_p0 = scmp.ne.s32.totalorder %s631_s23, %s627_s22 }
   0x6   : > { %p170_p1 = scmp.eq.s32.totalorder %s169_s29, 0  ;;  %p183_p2 = scmp.eq.s32.totalorder %s697_s25, 1 }
   0x7   : > { %p188_p3 = scmp.ne.s32.totalorder %s627_s22, %s623_s21  ;;  %p189_p4 = scmp.eq.s32.totalorder %s508_s26, 1 }
   0x8   : > { %s712_s30 = scalar_select %p170_p1, %s631_s23, %s172_s28  }
   0x9   : > { %p714_p5 = por %p183_p2, %p182_p0  ;;  %p718_p6 = por %p189_p4, %p188_p3 }
   0xa   : > { %p511_p7 = scmp.ge.s32.totalorder %s635_s24, 1  ;;  %p241_p8 = scmp.lt.s32.totalorder %s635_s24, 3 }
   0xc   : > { %p242_p9 = pnand %p511_p7, %p241_p8 }
   0xd   : > { %p282_p10 = scmp.lt.s32.totalorder (!%p242_p9), %s697_s25, 1  ;;  %v637_v0 = vmov (!%p242_p9), 0   ;;  %v638_v3 = vmov (!%p242_p9), 0.0   ;;  %vm639_vm0 = vmmov (!%p242_p9), 0   ;;  %v315_v4 = vld [vmem:[%s802_s5] sm:$0xff] (!%p242_p9)  ;;  %vm321_vm1 = vcmask (!%p242_p9), 64512  }
   0xe   : > { %245 = sbr.rel (%p242_p9) target bundleno = 393 (0x189), region = 44  ;;  %571 = vset.pattern.permute.xlu0 (!%p242_p9), %v637_v0  ;;  %572 = vset.pattern.permute.xlu1 (!%p242_p9), %v637_v0  ;;  %v314_v11 = vld [vmem:[%s801_s4] sm:$0xff] (!%p242_p9)  ;;  %s519_s15 = sshll.u32 (!%p242_p9), %s697_s25, 7  ;;  %vm397_vm2 = vcmask (!%p242_p9), 130048  }
   0xf   : > { %524 = vmatprep.subr.mxu0 (!%p242_p9), %v638_v3  ;;  %526 = vmatprep.mubr.msk.f32.mxu0 (!%p242_p9), %vm639_vm0, %v638_v3  ;;  %s755_s20 = scalar_lea.hbm (!%p242_p9), %s803_s6, %s519_s15 }
  0x10   : > { %318 = vperm.xlu1 (!%p242_p9), %572, %v315_v4  }
  0x15   : > { %s283_s9 = scalar_select %p282_p10, %s697_s25, 1 }
  0x16   : > { %s640_s25 = smov [#allocation2]  }
  0x17   : > { %s726_s10 = sshll.u32 %s283_s9, 3  ;;  %s279_s9 = sand.u32 1, %s627_s22  }
  0x18   : > { %s293_s13 = scalar_lea.vmem %s799_s2, %s726_s10  ;;  %s297_s16 = scalar_lea.vmem %s800_s3, %s726_s10 }
  0x19   : > { %v299_v1 = vld [vmem:[%s293_s13] sm:$0xff]  ;;  %s285_s26 = scalar_lea.vmem %s797_s0, %s726_s10  ;;  %s512_s11 = sshll.u32 %s279_s9, 3 }
  0x1a   : > { %302 = vperm.xlu0 %571, %v299_v1   ;;  %v306_v2 = vld [vmem:[%s297_s16] sm:$0xff]  ;;  %s289_s14 = scalar_lea.vmem %s798_s1, %s726_s10  ;;  %s281_s16 = scalar_lea.vmem [#allocation2], %s512_s11 }
  0x1b   : > { %v298_v6 = vld [vmem:[%s285_s26] sm:$0xff]  ;;  %s413_s17 = sshll.u32 %s281_s16, 4  ;;  %s400_s10 = scalar_lea.sflag [#allocation3], %s279_s9  ;;  %s757_s17 = int_to_ptr.vmem [resolvable:$true] %s413_s17 }
  0x1c   : > { %v395_v14 = vld [vmem:[%s289_s14] sm:$0xff]  ;;  %s573_s26 = scalar_lea.vmem %s757_s17, 128  ;;  %s577_s28 = sshll.u32 %s640_s25, 4  ;;  %s578_s28 = int_to_ptr.vmem [resolvable:$false] %s577_s28 }
  0x1d   : > { %p574_p11 = scmp.ne.s32.totalorder %s757_s17, %s573_s26  ;;  %s579_s29 = scalar_lea.vmem %s578_s28, 256 }
  0x1e   : > { %309 = vperm.xlu0 %571, %v306_v2   ;;  %p580_p0 = scmp.lt.s32.totalorder %s757_s17, %s578_s28  ;;  %p581_p1 = scmp.lt.s32.totalorder %s579_s29, %s573_s26 }
  0x1f   : > { %p575_p12 = pnand %p574_p11, %p714_p5 }
  0x20   : > { %p582_p2 = por %p581_p1, %p580_p0 }
  0x21   : > { %p576_p13 = pneg %p575_p12 }
  0x23   : > { %p583_p3 = pnand %p582_p2, %p576_p13 }
  0x8f   : > { %v319_v12 = vpop.permute.xlu1 %318 }
  0x99   : > { %v303_v5 = vpop.permute.xlu0 %302 }
  0x9a   : > { %v305_v7 = vmul.f32 %v303_v5, %v298_v6 }
  0x9d   : > { %v310_v8 = vpop.permute.xlu0 %309 }
  0x9e   : > { %v312_v9 = vadd.f32 %v310_v8, %v305_v7 }
  0xa0   : > { %v313_v10 = vmax.f32 %v312_v9, 0.0 }
  0xa2   : > { %525 = vmatpush3.msra.mxu0 %v313_v10 }
  0xa3   : > { %527 = vmatmul.mubr.msk.f32.vlgmr.msra.gmra.mrb[0].mxu0 %vm321_vm1, %v314_v11 }
 0x176   : > { %v391_v13 = vpop.f32.mrb[0].mxu0 }
 0x177   : > { %v392_v15 = vadd.f32 %v391_v13, %v319_v12  ;;  %v528_v16 = vpop.f32.mrb[1].mxu0 }
 0x179   : > { %v396_v17 = vadd.f32 %v395_v14, %v392_v15 }
 0x17b   : > { %398 = vst.msk [vmem:[%s281_s16] sm:$0xff] %vm397_vm2, %v396_v17 }
 0x17c   : > { %586 = shalt.err (!%p583_p3)
}
 0x17d   : > { %s587_s9 = scalar_lea.hbm %s755_s20, 128  ;;  %s591_s13 = scalar_lea.hbm %s803_s6, 256 }
 0x17e   : > { %p588_p4 = scmp.ne.s32.totalorder %s755_s20, %s587_s9  ;;  %p592_p9 = scmp.lt.u32.totalorder %s755_s20, %s803_s6 }
 0x17f   : > { %p593_p10 = scmp.lt.u32.totalorder %s591_s13, %s587_s9  ;;  %p595_p12 = scmp.lt.u32.totalorder %s587_s9, %s755_s20 }
 0x180   : > { %p589_p7 = pnand %p588_p4, %p714_p5 }
 0x181   : > { %p594_p11 = por %p593_p10, %p592_p9 }
 0x182   : > { %p590_p8 = pneg %p589_p7 }
 0x183   : > { %p596_p13 = por %p595_p12, %p594_p11 }
 0x185   : > { %p597_p0 = pnand %p596_p13, %p590_p8 }
 0x187   : > { %600 = shalt.err (!%p597_p0)
}
 0x188   : > { %529 = dma.vmem_to_hbm [thread:$0]  (%p714_p5), %s757_s17, 128, %s755_s20, %s400_s10  }
 0x189 PF: > { %p535_p1 = scmp.ge.s32.totalorder %s635_s24, 2  ;;  %s425_s16 = sand.u32 1, %s623_s21  }
 0x18a   : > { %s426_s18 = scalar_lea.sflag [#allocation3], %s425_s16 }
 0x18b   : > { %p532_p2 = pnand %p535_p1, %p718_p6 }
 0x18d   : > { %618 = dma.done.wait (!%p532_p2), %s426_s18, 128  }
 0x18e   : > { %620 = vsyncadd (!%p532_p2), %s426_s18, 4294967168  ;;  %p16_p3 = scmp.ge.s32.totalorder %s701_s27, 4   ;;  %s806_s21 = smov %s627_s22 }
 0x18f   : > { %s807_s22 = smov %s631_s23  ;;  %s808_s23 = smov %s712_s30 }
 0x190   : > { %s809_s24 = smov %s701_s27  ;;  %18 = sbr.rel (!%p16_p3) target bundleno = 3 (0x3), region = 88 }
 0x197   :  { %431 = vsyncpa [#allocation3], 1 }
 0x198   :  { %433 = vsyncpa [#allocation3 + $0x1], 1 }

</bundles_post_ra>
